<compile_context>
chip_gen: v5e
topology: v5e:2x2
jax: 0.10.0
libtpu: 0.0.40
codegen_flags: <defaults>
</compile_context>

<pallas_src>
import functools

import jax
import jax.numpy as jnp
from jax.experimental import pallas as pl
from jax.experimental.pallas import tpu as pltpu


def _chan_layernorm_kernel(x_ref, g_ref, o_ref, *, eps):
    # x_ref: (BN, C, TW)   g_ref: (1, C, 1)   o_ref: (BN, C, TW)
    x = x_ref[...].astype(jnp.float32)
    g = g_ref[...].astype(jnp.float32)
    # Single sweep over the tile: E[x] and E[x^2] along the channel axis.
    m1 = jnp.mean(x, axis=1, keepdims=True)            # (BN, 1, TW)
    m2 = jnp.mean(x * x, axis=1, keepdims=True)        # (BN, 1, TW)
    var = jnp.maximum(m2 - m1 * m1, 0.0)               # biased (unbiased=False)
    inv_std = jax.lax.rsqrt(var + eps)                  # EUP slot, ~free
    o_ref[...] = ((x - m1) * inv_std * g).astype(o_ref.dtype)


def _device_generation():
    try:
        kind = jax.devices()[0].device_kind.lower()
    except Exception:
        return "other"
    if "v7" in kind or "7x" in kind:
        return "v7x"
    if "v6" in kind:
        return "v6e"
    if "v5" in kind and ("lite" in kind or "5e" in kind):
        return "v5e"
    return "other"


def _vmem_capacity_bytes(gen):
    """Prefer querying the hardware; fall back to generation defaults."""
    try:
        info = pltpu.get_tpu_info()
        cap = getattr(info, "vmem_capacity_bytes", None)
        if cap:
            return int(cap)
    except Exception:
        pass
    return (64 << 20) if gen == "v7x" else (128 << 20)


def _choose_tiles(N, C, HW, itemsize, *, tile_budget, buffers_in, buffers_out,
                  gen, max_lane_tile=32768):
    """Pick (bn, tw) so each grid step moves the largest slab that fits VMEM.

    VMEM cost per (batch-row, lane) of the tile:
      - pipelined input slab:  buffers_in  * C_pad * itemsize
      - pipelined output slab: buffers_out * C_pad * itemsize
      - in-kernel f32 temporaries (x.astype(f32) + one extra): ~2 * C_pad * 4
    """
    sublane = 8 * max(1, 4 // itemsize)                  # f32: 8, bf16: 16
    c_pad = -(-C // sublane) * sublane
    bytes_per = (buffers_in + buffers_out) * c_pad * itemsize + 2 * c_pad * 4
    budget_lanes = max(128, tile_budget // bytes_per)    # bn * tw_pad budget

    hw_pad = -(-HW // 128) * 128
    if hw_pad <= budget_lanes and hw_pad <= max_lane_tile:
        # Whole spatial extent fits in one lane block; spend the rest on bn.
        tw = HW                                          # full-extent lane block
        bn = max(1, min(N, budget_lanes // hw_pad))
    else:
        # Spatial extent is large: tile lanes by the VMEM budget (no small cap).
        tw = max(128, (min(budget_lanes, max_lane_tile, HW) // 128) * 128)
        bn = 1

    # v7x only: 2 TensorCores per chip -> keep >= 2 blocks on a parallel axis.
    if gen == "v7x" and pl.cdiv(N, bn) * pl.cdiv(HW, tw) < 2:
        if N >= 2:
            bn = max(1, bn // 2)
        elif HW > 128:
            tw = max(128, ((-(-HW // 2)) + 127) // 128 * 128)
    return bn, tw


def _input_spec(shape, index_map, buffers_in):
    # Deeper input pipelining on v7x (output stays double-buffered).
    # TODO(synk): verify via pl.lower_as_mlir that Buffered(3) is honored under
    # PrefetchScalarGridSpec on v7x (silent fallback would lose pipeline depth).
    if buffers_in > 2 and hasattr(pl, "Buffered"):
        try:
            return pl.BlockSpec(shape, index_map, pipeline_mode=pl.Buffered(buffers_in))
        except Exception:
            pass
    return pl.BlockSpec(shape, index_map)


def chan_layer_norm(x_nchw, g, eps=1e-05, lane_tile=None, batch_tile=None):
    """x_nchw: (N, C, H, W); g: (1, C, 1, 1). Returns (N, C, H, W)."""
    N, C, H, W = x_nchw.shape
    HW = H * W
    x_flat = x_nchw.reshape(N, C, HW)
    g_flat = g.reshape(1, C, 1)

    gen = _device_generation()
    itemsize = jnp.dtype(x_nchw.dtype).itemsize
    vmem_cap = _vmem_capacity_bytes(gen)

    if gen == "v7x":
        # 64 MiB physical VMEM, 3.2 TB/s HBM: deeper input pipeline, tighter budget.
        buffers_in, buffers_out = 3, 2
        tile_budget, vmem_limit = 20 << 20, 48 << 20
    elif gen == "v5e":
        # ~0.82 TB/s HBM: moderate tiles already saturate; keep scoped limit modest.
        buffers_in, buffers_out = 2, 2
        tile_budget, vmem_limit = 12 << 20, 32 << 20
    elif gen == "v6e":
        # 128 MiB VMEM, 1.4 TB/s HBM: large slabs, high scoped limit.
        buffers_in, buffers_out = 2, 2
        tile_budget, vmem_limit = 48 << 20, 96 << 20
    else:
        buffers_in, buffers_out = 2, 2
        tile_budget, vmem_limit = 24 << 20, 64 << 20

    # Stay robust if the hardware reports a smaller VMEM than assumed.
    vmem_limit = min(vmem_limit, (vmem_cap * 3) // 4)
    tile_budget = min(tile_budget, vmem_limit // 2)

    bn, tw = _choose_tiles(N, C, HW, itemsize,
                           tile_budget=tile_budget,
                           buffers_in=buffers_in, buffers_out=buffers_out,
                           gen=gen)
    if lane_tile is not None:
        tw = lane_tile
    if batch_tile is not None:
        bn = batch_tile

    grid = (pl.cdiv(N, bn), pl.cdiv(HW, tw))
    kernel = functools.partial(_chan_layernorm_kernel, eps=float(eps))

    # TODO(synk): on v7x, consider pltpu.CORE_PARALLEL on one grid axis to
    # guarantee TensorCore sharding; plain "parallel" is kept here for
    # portability across generations.
    out_flat = pl.pallas_call(
        kernel,
        out_shape=jax.ShapeDtypeStruct((N, C, HW), x_nchw.dtype),
        grid_spec=pltpu.PrefetchScalarGridSpec(
            num_scalar_prefetch=0,
            grid=grid,
            in_specs=[
                _input_spec((bn, C, tw), lambda n, w: (n, 0, w), buffers_in),
                pl.BlockSpec((1, C, 1), lambda n, w: (0, 0, 0)),
            ],
            out_specs=pl.BlockSpec((bn, C, tw), lambda n, w: (n, 0, w)),
        ),
        compiler_params=pltpu.CompilerParams(
            dimension_semantics=("parallel", "parallel"),
            vmem_limit_bytes=vmem_limit,
        ),
    )(x_flat, g_flat)

    return out_flat.reshape(N, C, H, W)


def _reference(x, g, eps=1e-05):
    mean = jnp.mean(x, axis=1, keepdims=True)
    var = jnp.mean((x - mean) ** 2, axis=1, keepdims=True)  # unbiased=False
    return (x - mean) / jnp.sqrt(var + eps) * g


if __name__ == "__main__":
    key = jax.random.PRNGKey(0)

    # Main check: shapes consistent with the module.
    N, C, H, W = 2, 4, 16, 16
    x = jax.random.normal(key, (N, C, H, W), dtype=jnp.float32)
    # Parameter init matches nn.Parameter(torch.ones(1, dim, 1, 1))
    g = jnp.ones((1, C, 1, 1), dtype=jnp.float32)

    out = jax.block_until_ready(chan_layer_norm(x, g))
    ref = _reference(x, g)
    assert out.shape == (N, C, H, W)
    assert jnp.allclose(out, ref, atol=1e-5, rtol=1e-5)

    # Secondary check: spatial size not a multiple of 128 (full-extent lane
    # block / masked edge path) plus batch blocking.
    H2, W2 = 9, 15  # HW = 135
    x2 = jax.random.normal(jax.random.PRNGKey(1), (N, C, H2, W2), dtype=jnp.float32)
    out2 = jax.block_until_ready(chan_layer_norm(x2, g))
    ref2 = _reference(x2, g)
    assert out2.shape == (N, C, H2, W2)
    assert jnp.allclose(out2, ref2, atol=1e-5, rtol=1e-5)

    # Tertiary check: force the tiled (multi-step) path with explicit tiles so
    # the edge-lane and edge-batch masking is exercised even on big-VMEM parts.
    H3, W3 = 12, 25  # HW = 300 -> grid = (2, 3) with bn=1, tw=128
    x3 = jax.random.normal(jax.random.PRNGKey(2), (N, C, H3, W3), dtype=jnp.float32)
    out3 = jax.block_until_ready(chan_layer_norm(x3, g, lane_tile=128, batch_tile=1))
    ref3 = _reference(x3, g)
    assert out3.shape == (N, C, H3, W3)
    assert jnp.allclose(out3, ref3, atol=1e-5, rtol=1e-5)

    print("KERNEL_OK")
</pallas_src>

<mosaic_0001>
module attributes {stable_mosaic.version = 11 : i64} {
  func.func @_chan_layernorm_kernel(%arg0: i32, %arg1: i32, %arg2: memref<2x4x256xf32, #tpu.memory_space<vmem>>, %arg3: memref<1x4x1xf32, #tpu.memory_space<vmem>>, %arg4: memref<2x4x256xf32, #tpu.memory_space<vmem>>) attributes {dimension_semantics = [#tpu.dimension_semantics<parallel>, #tpu.dimension_semantics<parallel>], iteration_bounds = array<i64: 1, 1>, scalar_prefetch = 0 : i64, scratch_operands = 0 : i64, tpu.core_type = #tpu.core_type<tc>, window_params = [{transform_indices = @transform_0, window_bounds = array<i64: 2, 4, 256>}, {pipeline_mode = #tpu.pipeline_mode<synchronous>, transform_indices = @transform_1, window_bounds = array<i64: 1, 4, 1>}, {transform_indices = @transform_2, window_bounds = array<i64: 2, 4, 256>}]} {
    %c0 = arith.constant 0 : index
    %c0_0 = arith.constant 0 : index
    %c0_1 = arith.constant 0 : index
    %0 = vector.load %arg2[%c0, %c0_0, %c0_1] : memref<2x4x256xf32, #tpu.memory_space<vmem>>, vector<2x4x256xf32>
    %c0_2 = arith.constant 0 : index
    %c0_3 = arith.constant 0 : index
    %c0_4 = arith.constant 0 : index
    %1 = vector.load %arg3[%c0_2, %c0_3, %c0_4] : memref<1x4x1xf32, #tpu.memory_space<vmem>>, vector<1x4x1xf32>
    %cst = arith.constant dense<0.000000e+00> : vector<2x256xf32>
    %2 = vector.multi_reduction <add>, %0, %cst [1] : vector<2x4x256xf32> to vector<2x256xf32>
    %3 = vector.shape_cast %2 : vector<2x256xf32> to vector<2x1x256xf32>
    %cst_5 = arith.constant 4.000000e+00 : f32
    %4 = vector.broadcast %cst_5 : f32 to vector<2x1x256xf32>
    %5 = arith.divf %3, %4 : vector<2x1x256xf32>
    %6 = arith.mulf %0, %0 : vector<2x4x256xf32>
    %cst_6 = arith.constant dense<0.000000e+00> : vector<2x256xf32>
    %7 = vector.multi_reduction <add>, %6, %cst_6 [1] : vector<2x4x256xf32> to vector<2x256xf32>
    %8 = vector.shape_cast %7 : vector<2x256xf32> to vector<2x1x256xf32>
    %cst_7 = arith.constant 4.000000e+00 : f32
    %9 = vector.broadcast %cst_7 : f32 to vector<2x1x256xf32>
    %10 = arith.divf %8, %9 : vector<2x1x256xf32>
    %11 = arith.mulf %5, %5 : vector<2x1x256xf32>
    %12 = arith.subf %10, %11 : vector<2x1x256xf32>
    %cst_8 = arith.constant 0.000000e+00 : f32
    %13 = vector.broadcast %cst_8 : f32 to vector<2x1x256xf32>
    %14 = arith.maximumf %12, %13 : vector<2x1x256xf32>
    %cst_9 = arith.constant 9.99999974E-6 : f32
    %15 = vector.broadcast %cst_9 : f32 to vector<2x1x256xf32>
    %16 = arith.addf %14, %15 : vector<2x1x256xf32>
    %17 = math.rsqrt %16 : vector<2x1x256xf32>
    %18 = vector.broadcast %5 : vector<2x1x256xf32> to vector<2x4x256xf32>
    %19 = arith.subf %0, %18 : vector<2x4x256xf32>
    %20 = vector.broadcast %17 : vector<2x1x256xf32> to vector<2x4x256xf32>
    %21 = arith.mulf %19, %20 : vector<2x4x256xf32>
    %22 = vector.broadcast %1 : vector<1x4x1xf32> to vector<2x4x256xf32>
    %23 = arith.mulf %21, %22 : vector<2x4x256xf32>
    %c0_10 = arith.constant 0 : index
    %c0_11 = arith.constant 0 : index
    %c0_12 = arith.constant 0 : index
    %24 = vector.load %arg4[%c0_10, %c0_11, %c0_12] : memref<2x4x256xf32, #tpu.memory_space<vmem>>, vector<2x4x256xf32>
    tpu.vector_store %arg4[%c0_10, %c0_11, %c0_12], %23 {strides = array<i32>} : memref<2x4x256xf32, #tpu.memory_space<vmem>>, vector<2x4x256xf32>,
    return
  }
  func.func @transform_0(%arg0: i32, %arg1: i32) -> (i32, i32, i32) {
    %c0_i32 = arith.constant 0 : i32
    %c0_i32_0 = arith.constant 0 : i32
    return %arg0, %c0_i32, %arg1 : i32, i32, i32
  }
  func.func @transform_1(%arg0: i32, %arg1: i32) -> (i32, i32, i32) {
    %c0_i32 = arith.constant 0 : i32
    %c0_i32_0 = arith.constant 0 : i32
    %c0_i32_1 = arith.constant 0 : i32
    %c0_i32_2 = arith.constant 0 : i32
    return %c0_i32, %c0_i32_0, %c0_i32_1 : i32, i32, i32
  }
  func.func @transform_2(%arg0: i32, %arg1: i32) -> (i32, i32, i32) {
    %c0_i32 = arith.constant 0 : i32
    %c0_i32_0 = arith.constant 0 : i32
    return %arg0, %c0_i32, %arg1 : i32, i32, i32
  }
}

</mosaic_0001>

<bundles_post_ra>
// kernel: tpu_custom_call.1
= control target key start
LH: loop header
LB: loop body
LE: loop exit
PB: predicated region body
PF: predicated region fallthrough
CT: control target
= control target key end

     0   :  { %7 = vsyncpa [#allocation3], 0  ;;  %s406_s0 = inlined_call_operand.hbm [shape: f32[2,4,256], index: 0, kind: input, shape index: {}]   ;;  %s407_s1 = inlined_call_operand.vmem [shape: f32[1,4,1], index: 1, kind: input, shape index: {}]   ;;  %s408_s2 = inlined_call_operand.hbm [shape: f32[2,4,256], index: 2, kind: output, shape index: {}]  }
   0x1   :  { %8 = vsyncpa [#allocation4], 0  ;;  %s13_s11 = sshll.u32 %s406_s0, 4  ;;  %s313_s12 = smov [#allocation2]   ;;  %s14_s11 = int_to_ptr.hbm [resolvable:$true] %s13_s11 }
   0x2   :  { %s15_s13 = sshll.u32 %s313_s12, 4  ;;  %s314_s14 = smov 128   ;;  %s16_s13 = int_to_ptr.vmem [resolvable:$true] %s15_s13 }
   0x3   :  { %s315_s15 = smov 8  }
   0x4   :  { %21 = dma.hbm_to_vmem [thread:$0]  %s14_s11, 256, %s16_s13, [#allocation3], %s314_s14, %s314_s14, %s315_s15  }
   0x5   :  { %309 = dma.done.wait [#allocation3], 256  }
   0x6   :  { %310 = vsyncadd [#allocation3], 4294967040  ;;  %v316_v0 = vmov 0   ;;  %v30_v1 = vld [vmem:[%s407_s1] sm:$0xf]  ;;  %v317_v2 = vmov 4.0  }
   0x7   :  { %250 = vset.pattern.permute.xlu0 %v316_v0  ;;  %251 = vrcp.f32 %v317_v2  ;;  %v344_v4 = vld [vmem:[#allocation2] sm:$0xff]  ;;  %v346_v5 = vld [vmem:[#allocation2 + $0x8] sm:$0xff]  ;;  %vm44_vm0 = vcmask 1043456   ;;  %s319_s0 = smov [#allocation5]   ;;  %s230_s20 = sshll.u32 %s408_s2, 4  ;;  %s231_s20 = int_to_ptr.hbm [resolvable:$true] %s230_s20 }
   0x8   :  { %213 = vperm.xlu0 %250, %v30_v1   ;;  %33 = vst [vmem:[#allocation1] ss:$2 sm:$0xff] %v344_v4  ;;  %v84_v8 = vmul.f32 %v344_v4, %v344_v4  ;;  %v85_v9 = vmul.f32 %v346_v5, %v346_v5  ;;  %s228_s1 = sshll.u32 %s319_s0, 4  ;;  %s229_s1 = int_to_ptr.vmem [resolvable:$true] %s228_s1 }
   0x9   :  { %37 = vst [vmem:[#allocation1 + $0x10] ss:$2 sm:$0xff] %v346_v5 }
   0xd   :  { %v252_v3 = vpop.eup %251 }
   0xe   :  { %v74_v6 = vmul.f32 4.0, %v252_v3  ;;  %vm78_vm1 = vweird.f32 %v252_v3 }
   0xf   :  { %v34_v10 = vld.sshfl [vmem:[#allocation1] sm:$0xff pattern:$0x75316420]  ;;  %v35_v11 = vld.sshfl [vmem:[#allocation1 + $0x8] sm:$0xff pattern:$0x75316420] }
  0x10   :  { %v75_v7 = vsub.f32 1.0, %v74_v6  ;;  %v38_v12 = vld.sshfl [vmem:[#allocation1 + $0x10] sm:$0xff pattern:$0x75316420]  ;;  %88 = vst [vmem:[#allocation1] ss:$2 sm:$0xff] %v84_v8 }
  0x11   :  { %v39_v13 = vld.sshfl [vmem:[#allocation1 + $0x18] sm:$0xff pattern:$0x75316420]  ;;  %v52_v16 = vsel %vm44_vm0, %v35_v11, 0.0  ;;  %v45_v20 = vsel %vm44_vm0, %v34_v10, 0.0  ;;  %v59_v21 = vsel %vm44_vm0, %v38_v12, 0.0 }
  0x12   :  { %v76_v14 = vmul.f32 %v252_v3, %v75_v7  ;;  %92 = vst [vmem:[#allocation1 + $0x10] ss:$2 sm:$0xff] %v85_v9  ;;  %v66_v17 = vsel %vm44_vm0, %v39_v13, 0.0  ;;  %v53_v18 = vrot.slane %v52_v16, 4  ;;  %v46_v23 = vrot.slane %v45_v20, 4 }
  0x13   :  { %v67_v19 = vrot.slane %v66_v17, 4  ;;  %v60_v25 = vrot.slane %v59_v21, 4 }
  0x14   :  { %v77_v15 = vadd.f32 %v252_v3, %v76_v14  ;;  %v54_v24 = vadd.f32 %v53_v18, %v52_v16  ;;  %v47_v31 = vadd.f32 %v46_v23, %v45_v20 }
  0x15   :  { %v68_v26 = vadd.f32 %v67_v19, %v66_v17  ;;  %v61_v33 = vadd.f32 %v60_v25, %v59_v21 }
  0x16   :  { %v79_v28 = vsel %vm78_vm1, %v252_v3, %v77_v15  ;;  %v55_v32 = vrot.slane %v54_v24, 2  ;;  %v48_v39 = vrot.slane %v47_v31, 2 }
  0x17   :  { %v90_v22 = vld.sshfl [vmem:[#allocation1 + $0x8] sm:$0xff pattern:$0x75316420]  ;;  %v89_v27 = vld.sshfl [vmem:[#allocation1] sm:$0xff pattern:$0x75316420] }
  0x18   :  { %v69_v34 = vrot.slane %v68_v26, 2  ;;  %v99_v35 = vsel %vm44_vm0, %v89_v27, 0.0  ;;  %v106_v36 = vsel %vm44_vm0, %v90_v22, 0.0  ;;  %v56_v40 = vadd.f32 %v55_v32, %v54_v24 }
  0x19   :  { %v93_v29 = vld.sshfl [vmem:[#allocation1 + $0x10] sm:$0xff pattern:$0x75316420]  ;;  %v94_v30 = vld.sshfl [vmem:[#allocation1 + $0x18] sm:$0xff pattern:$0x75316420]  ;;  %v49_v47 = vadd.f32 %v48_v39, %v47_v31 }
  0x1a   :  { %v113_v37 = vsel %vm44_vm0, %v93_v29, 0.0  ;;  %v120_v38 = vsel %vm44_vm0, %v94_v30, 0.0  ;;  %v62_v41 = vrot.slane %v61_v33, 2  ;;  %v70_v42 = vadd.f32 %v69_v34, %v68_v26 }
  0x1b   :  { %v100_v43 = vrot.slane %v99_v35, 4  ;;  %v107_v44 = vrot.slane %v106_v36, 4  ;;  %v114_v45 = vrot.slane %v113_v37, 4  ;;  %v121_v46 = vrot.slane %v120_v38, 4 }
  0x1c   :  { %v57_v48 = vrot.slane %v56_v40, 1  ;;  %v63_v49 = vadd.f32 %v62_v41, %v61_v33  ;;  %v71_v50 = vrot.slane %v70_v42, 1  ;;  %v50_v55 = vrot.slane %v49_v47, 1 }
  0x1d   :  { %v101_v51 = vadd.f32 %v100_v43, %v99_v35  ;;  %v108_v52 = vadd.f32 %v107_v44, %v106_v36  ;;  %v115_v53 = vadd.f32 %v114_v45, %v113_v37  ;;  %v122_v54 = vadd.f32 %v121_v46, %v120_v38 }
  0x1e   :  { %v58_v56 = vadd.f32 %v57_v48, %v56_v40  ;;  %v64_v57 = vrot.slane %v63_v49, 1  ;;  %v72_v58 = vadd.f32 %v71_v50, %v70_v42  ;;  %v51_v63 = vadd.f32 %v50_v55, %v49_v47 }
  0x1f   :  { %v102_v59 = vrot.slane %v101_v51, 2  ;;  %v109_v60 = vrot.slane %v108_v52, 2  ;;  %v116_v61 = vrot.slane %v115_v53, 2  ;;  %v123_v62 = vrot.slane %v122_v54, 2 }
  0x20   :  { %v362_v0 = vmul.f32 %v79_v28, %v58_v56  ;;  %v65_v7 = vadd.f32 %v64_v57, %v63_v49  ;;  %v364_v8 = vmul.f32 %v79_v28, %v72_v58  ;;  %v366_v13 = vmul.f32 %v79_v28, %v51_v63 }
  0x21   :  { %v103_v1 = vadd.f32 %v102_v59, %v101_v51  ;;  %v110_v2 = vadd.f32 %v109_v60, %v108_v52  ;;  %v117_v3 = vadd.f32 %v116_v61, %v115_v53  ;;  %v124_v6 = vadd.f32 %v123_v62, %v122_v54 }
  0x22   :  { %v132_v17 = vmul.f32 %v362_v0, %v362_v0  ;;  %v370_v18 = vmul.f32 %v79_v28, %v65_v7  ;;  %v134_v20 = vmul.f32 %v364_v8, %v364_v8  ;;  %v131_v24 = vmul.f32 %v366_v13, %v366_v13 }
  0x23   :  { %v104_v9 = vrot.slane %v103_v1, 1  ;;  %v111_v10 = vrot.slane %v110_v2, 1  ;;  %v118_v11 = vrot.slane %v117_v3, 1  ;;  %v125_v12 = vrot.slane %v124_v6, 1 }
  0x24   :  { %v133_v27 = vmul.f32 %v370_v18, %v370_v18  ;;  %v191_v62 = vrot.slane %v362_v0, 4  ;;  %v192_v63 = vrot.slane %v364_v8, 4  ;;  %v318_v8 = vmov 839922192  }
  0x25   :  { %v105_v14 = vadd.f32 %v104_v9, %v103_v1  ;;  %v112_v15 = vadd.f32 %v111_v10, %v110_v2  ;;  %v126_v16 = vadd.f32 %v125_v12, %v124_v6  ;;  %v119_v19 = vadd.f32 %v118_v11, %v117_v3 }
  0x26   :  { %v193_v9 = vsel %vm44_vm0, %v366_v13, %v191_v62  ;;  %v194_v10 = vsel %vm44_vm0, %v370_v18, %v192_v63  ;;  %v216_v12 = vunpack.c.l.s4 %v318_v8 }
  0x27   :  { %v128_v21 = vmul.f32 %v112_v15, %v79_v28  ;;  %v130_v22 = vmul.f32 %v126_v16, %v79_v28  ;;  %v127_v23 = vmul.f32 %v105_v14, %v79_v28  ;;  %v129_v26 = vmul.f32 %v119_v19, %v79_v28 }
  0x28   :  { %v197_v16 = vsub.f32 %v344_v4, %v193_v9  ;;  %v217_v13 = vunpack.c.0.s8 %v216_v12 }
  0x29   :  { %v136_v25 = vsub.f32 %v128_v21, %v132_v17  ;;  %v138_v29 = vsub.f32 %v130_v22, %v134_v20  ;;  %v135_v30 = vsub.f32 %v127_v23, %v131_v24  ;;  %v137_v32 = vsub.f32 %v129_v26, %v133_v27 }
  0x2a   :  { %v198_v17 = vsub.f32 %v346_v5, %v194_v10 }
  0x2b   :  { %v140_v31 = vmax.f32 %v136_v25, 0.0  ;;  %v142_v33 = vmax.f32 %v138_v29, 0.0  ;;  %v139_v34 = vmax.f32 %v135_v30, 0.0  ;;  %v141_v36 = vmax.f32 %v137_v32, 0.0 }
  0x2d   :  { %v144_v35 = vadd.f32 1e-05, %v140_v31  ;;  %v146_v37 = vadd.f32 1e-05, %v142_v33  ;;  %v143_v38 = vadd.f32 1e-05, %v139_v34 }
  0x2e   :  { %v145_v39 = vadd.f32 1e-05, %v141_v36 }
  0x2f   :  { %253 = vrsqrt.f32 %v144_v35  ;;  %vm163_vm2 = vweird.f32 %v144_v35  ;;  %vm183_vm4 = vweird.f32 %v146_v37  ;;  %vm153_vm7 = vweird.f32 %v143_v38 }
  0x30   :  { %255 = vrsqrt.f32 %v146_v37  ;;  %vm173_vm10 = vweird.f32 %v145_v39 }
  0x31   :  { %257 = vrsqrt.f32 %v143_v38 }
  0x32   :  { %259 = vrsqrt.f32 %v145_v39 }
  0x35   :  { %v254_v40 = vpop.eup %253 }
  0x36   :  { %v256_v28 = vpop.eup %255  ;;  %v158_v42 = vmul.f32 %v254_v40, %v144_v35  ;;  %vm164_vm3 = vweird.f32 %v254_v40 }
  0x37   :  { %v258_v41 = vpop.eup %257  ;;  %v178_v43 = vmul.f32 %v256_v28, %v146_v37  ;;  %vm184_vm5 = vweird.f32 %v256_v28  ;;  %vm378_vm6 = vmor %vm163_vm2, %vm164_vm3 }
  0x38   :  { %v260_v44 = vpop.eup %259  ;;  %v148_v45 = vmul.f32 %v258_v41, %v143_v38  ;;  %v159_v46 = vmul.f32 %v254_v40, %v158_v42  ;;  %vm154_vm8 = vweird.f32 %v258_v41  ;;  %vm185_vm9 = vmor %vm183_vm4, %vm184_vm5 }
  0x39   :  { %v168_v47 = vmul.f32 %v260_v44, %v145_v39  ;;  %v179_v48 = vmul.f32 %v256_v28, %v178_v43  ;;  %vm174_vm11 = vweird.f32 %v260_v44  ;;  %vm384_vm12 = vmor %vm153_vm7, %vm154_vm8 }
  0x3a   :  { %v149_v49 = vmul.f32 %v258_v41, %v148_v45  ;;  %v160_v50 = vmul.f32 0.5, %v159_v46  ;;  %vm175_vm13 = vmor %vm173_vm10, %vm174_vm11 }
  0x3b   :  { %v169_v51 = vmul.f32 %v260_v44, %v168_v47  ;;  %v180_v52 = vmul.f32 0.5, %v179_v48 }
  0x3c   :  { %v150_v53 = vmul.f32 0.5, %v149_v49  ;;  %v161_v54 = vsub.f32 1.5, %v160_v50 }
  0x3d   :  { %v170_v55 = vmul.f32 0.5, %v169_v51  ;;  %v181_v56 = vsub.f32 1.5, %v180_v52 }
  0x3e   :  { %v151_v57 = vsub.f32 1.5, %v150_v53  ;;  %v162_v58 = vmul.f32 %v254_v40, %v161_v54 }
  0x3f   :  { %v171_v60 = vsub.f32 1.5, %v170_v55  ;;  %v182_v61 = vmul.f32 %v256_v28, %v181_v56 }
  0x40   :  { %v152_v1 = vmul.f32 %v258_v41, %v151_v57  ;;  %v166_v3 = vsel %vm378_vm6, %v254_v40, %v162_v58 }
  0x41   :  { %v172_v6 = vmul.f32 %v260_v44, %v171_v60  ;;  %v186_v7 = vsel %vm185_vm9, %v256_v28, %v182_v61  ;;  %v203_v0 = vrot.slane %v166_v3, 4 }
  0x42   :  { %v204_v11 = vrot.slane %v186_v7, 4  ;;  %v156_v14 = vsel %vm384_vm12, %v258_v41, %v152_v1 }
  0x43   :  { %v176_v15 = vsel %vm175_vm13, %v260_v44, %v172_v6  ;;  %v205_v19 = vsel %vm44_vm0, %v156_v14, %v203_v0 }
  0x44   :  { %v206_v20 = vsel %vm44_vm0, %v176_v15, %v204_v11  ;;  %v209_v21 = vmul.f32 %v205_v19, %v197_v16 }
  0x45   :  { %v210_v22 = vmul.f32 %v206_v20, %v198_v17 }
  0x7a   :  { %v214_v18 = vpop.permute.xlu0 %213 }
  0x7b   :  { %v218_v23 = vperm.slane %v214_v18, %v217_v13 }
  0x7d   :  { %v220_v24 = vmul.f32 %v218_v23, %v209_v21  ;;  %v221_v25 = vmul.f32 %v218_v23, %v210_v22 }
  0x7f   :  { %222 = vst [vmem:[#allocation5] sm:$0xff] %v220_v24 }
  0x80   :  { %223 = vst [vmem:[#allocation5 + $0x8] sm:$0xff] %v221_v25 }
  0x81   :  { %236 = dma.vmem_to_hbm [thread:$0]  %s229_s1, 256, %s231_s20, [#allocation4], %s314_s14, %s314_s14, %s315_s15  }
  0x82   :  { %311 = dma.done.wait [#allocation4], 256  }
  0x83   :  { %312 = vsyncadd [#allocation4], 4294967040 }
  0x84   :  { %241 = vsyncpa [#allocation3], 1 }
  0x85   :  { %242 = vsyncpa [#allocation4], 1 }

</bundles_post_ra>
